<compile_context>
chip_gen: v6e
topology: v6e:2x2x1
jax: 0.10.0
libtpu: 0.0.40
codegen_flags: <defaults>
</compile_context>

<pallas_src>
import jax
import jax.numpy as jnp
from jax import lax
from jax.experimental import pallas as pl
from jax.experimental.pallas import tpu as pltpu


def _round_up(v, m):
    return ((v + m - 1) // m) * m


def _pad_axis(a, axis, target, value=0):
    pad = target - a.shape[axis]
    if pad <= 0:
        return a
    widths = [(0, 0)] * a.ndim
    widths[axis] = (0, pad)
    return jnp.pad(a, widths, constant_values=value)


def _attend(x_proj_bf16, y_proj_bf16, y_ref, mb_ref, o_ref):
    """Shared tail: scores -> masked softmax -> att @ y."""
    # scores: (TLx, Lyp), contracting the (padded) feature dim of both operands.
    scores = lax.dot_general(
        x_proj_bf16, y_proj_bf16, (((1,), (1,)), ((), ())),
        preferred_element_type=jnp.float32)

    # masked_fill_(mask, -inf) as an additive bias: one VPU add; padded /
    # masked Ly positions carry -1e30 so their softmax weight underflows to 0.
    scores = scores + mb_ref[...]

    # softmax over the Ly axis (f32); approx reciprocal goes to the EUP slot.
    s_max = jnp.max(scores, axis=-1, keepdims=True)
    p = jnp.exp(scores - s_max)
    denom = jnp.sum(p, axis=-1, keepdims=True)
    att = p * pl.reciprocal(denom, approx=True)

    # weighted question: (TLx, Dp)
    out = jnp.dot(att.astype(jnp.bfloat16),
                  y_ref[...].astype(jnp.bfloat16),
                  preferred_element_type=jnp.float32)
    o_ref[...] = out.astype(o_ref.dtype)


def _linear_kernel(x_ref, y_ref, mb_ref, wT_ref, b_ref, o_ref, yproj_ref):
    """Per-(batch, Lx-tile) body, linear+ReLU variant.

    Ref shapes (batch dim squeezed away by the BlockSpecs):
      x_ref     : (TLx, Dp)  native dtype   -- one Lx tile of x
      y_ref     : (Lyp, Dp)  native dtype   -- whole (padded) y sequence
      mb_ref    : (1,  Lyp)  f32            -- additive mask bias (0 / -1e30)
      wT_ref    : (Dp, Dp)   bf16           -- W^T, resident across the grid
      b_ref     : (1,  Dp)   f32            -- linear bias
      o_ref     : (TLx, Dp)  x.dtype        -- output tile
      yproj_ref : (Lyp, Dp)  bf16 scratch   -- relu(y @ W^T + b), built once per
                                              batch (on the first Lx tile)
    """
    # y projection is shared by every Lx tile of this batch: compute it once
    # into the persistent VMEM scratch (grid iterates Lx fastest).
    @pl.when(pl.program_id(1) == 0)
    def _():
        yp = jnp.dot(y_ref[...].astype(jnp.bfloat16), wT_ref[...],
                     preferred_element_type=jnp.float32)
        yproj_ref[...] = jnp.maximum(yp + b_ref[...], 0.0).astype(jnp.bfloat16)

    xp = jnp.dot(x_ref[...].astype(jnp.bfloat16), wT_ref[...],
                 preferred_element_type=jnp.float32)
    x_proj = jnp.maximum(xp + b_ref[...], 0.0).astype(jnp.bfloat16)

    _attend(x_proj, yproj_ref[...], y_ref, mb_ref, o_ref)


def _identity_kernel(x_ref, y_ref, mb_ref, o_ref):
    """Per-(batch, Lx-tile) body, identity variant (no linear / ReLU)."""
    _attend(x_ref[...].astype(jnp.bfloat16),
            y_ref[...].astype(jnp.bfloat16),
            y_ref, mb_ref, o_ref)


def seq_att_alignment(x, y, y_mask, weight=None, bias=None, *,
                      identity=False, tile_lx=256):
    """Pallas implementation of SeqAttAlignment.forward.

    x: (B, Lx, D), y: (B, Ly, D), y_mask: (B, Ly) (nonzero == masked).
    weight: (D, D), bias: (D,) in nn.Linear convention (out = x @ W^T + b);
    both ignored when identity=True.
    """
    B, Lx, D = x.shape
    _, Ly, _ = y.shape
    assert y.shape[0] == B and y.shape[2] == D and y_mask.shape == (B, Ly)

    # ---- pad to TPU-friendly shapes (zero padding is exact: padded feature
    # columns contribute 0 to every contraction, padded Ly rows are masked,
    # padded Lx rows are sliced off) --------------------------------------
    Dp = _round_up(D, 128)                   # lane-dense feature dim
    tlx = min(tile_lx, _round_up(Lx, 8))     # Lx tile (sublane multiple)
    Lxp = _round_up(Lx, tlx)
    Lyp = _round_up(Ly, 8)

    x_p = _pad_axis(_pad_axis(x, 2, Dp), 1, Lxp)   # native dtype, no f32 up-cast
    y_p = _pad_axis(_pad_axis(y, 2, Dp), 1, Lyp)

    # additive mask bias: 0 where attendable, -1e30 where masked (and on padding)
    mb = jnp.where(y_mask != 0, jnp.float32(-1e30), jnp.float32(0.0))
    mb = _pad_axis(mb, 1, Lyp, value=-1e30).reshape(B, 1, Lyp)

    in_specs = [
        # x: one (TLx, Dp) tile per grid step
        pl.BlockSpec((pl.Squeezed(), tlx, Dp), lambda b, i: (b, i, 0)),
        # y: whole padded sequence; block index constant across Lx tiles, so it
        # stays resident (re-DMA'd only when the batch index changes)
        pl.BlockSpec((pl.Squeezed(), Lyp, Dp), lambda b, i: (b, 0, 0)),
        # additive mask bias
        pl.BlockSpec((pl.Squeezed(), 1, Lyp), lambda b, i: (b, 0, 0)),
    ]
    operands = [x_p, y_p, mb]
    scratch_shapes = []

    xb = jnp.dtype(x.dtype).itemsize
    yb = jnp.dtype(y.dtype).itemsize
    # rough per-step VMEM footprint (double-buffered BlockSpec inputs/outputs,
    # resident scratch + weight, f32 score intermediate)
    vmem_est = (2 * tlx * Dp * xb + 2 * Lyp * Dp * yb + 2 * Lyp * 4
                + 2 * tlx * Dp * xb + tlx * Lyp * 4 + tlx * Dp * 4)

    if identity:
        kernel = _identity_kernel
    else:
        kernel = _linear_kernel
        wT = jnp.asarray(weight).T.astype(jnp.bfloat16)      # resident, half VMEM
        wT = _pad_axis(_pad_axis(wT, 0, Dp), 1, Dp)
        b2 = _pad_axis(jnp.asarray(bias, jnp.float32).reshape(1, D), 1, Dp)
        # shared weight / bias: constant-indexed -> stay resident in VMEM
        in_specs += [pl.BlockSpec((Dp, Dp), lambda b, i: (0, 0)),
                     pl.BlockSpec((1, Dp), lambda b, i: (0, 0))]
        operands += [wT, b2]
        scratch_shapes = [pltpu.VMEM((Lyp, Dp), jnp.bfloat16)]   # y_proj cache
        vmem_est += 2 * Dp * Dp * 2 + 2 * Dp * 4 + Lyp * Dp * 2 + Lyp * Dp * 4

    # Only raise the scoped-VMEM limit when the estimate says the default will
    # not fit (keeps small shapes on the default pipeline budget).
    vmem_limit = None
    if vmem_est > (28 << 20):
        vmem_limit = min(int(vmem_est * 1.25) + (4 << 20), 112 << 20)

    n_lx = Lxp // tlx
    grid_spec = pltpu.PrefetchScalarGridSpec(
        num_scalar_prefetch=0,
        grid=(B, n_lx),
        in_specs=in_specs,
        out_specs=pl.BlockSpec((pl.Squeezed(), tlx, Dp), lambda b, i: (b, i, 0)),
        scratch_shapes=scratch_shapes,
    )

    out = pl.pallas_call(
        kernel,
        out_shape=jax.ShapeDtypeStruct((B, Lxp, Dp), x.dtype),
        grid_spec=grid_spec,
        compiler_params=pltpu.CompilerParams(
            # batch axis shards across TCs (v7x megacore); Lx-tile axis must
            # stay "arbitrary" because the y_proj scratch is carried across it.
            dimension_semantics=("parallel", "arbitrary"),
            vmem_limit_bytes=vmem_limit,
        ),
    )(*operands)

    return out[:, :Lx, :D]


def _reference(x, y, y_mask, weight=None, bias=None, *,
               identity=False, emulate_bf16=False):
    """Pure-JAX reference. With emulate_bf16=True it rounds the matmul operands
    to bf16 (f32 accumulation), mirroring the kernel's MXU numerics."""
    f32 = jnp.float32
    cast = (lambda t: t.astype(jnp.bfloat16)) if emulate_bf16 else (
        lambda t: t.astype(f32))
    if identity:
        x_proj, y_proj = cast(x), cast(y)
    else:
        wT = cast(jnp.asarray(weight).T)
        x_proj = jax.nn.relu(jnp.einsum("bld,de->ble", cast(x), wT,
                                        preferred_element_type=f32) + bias)
        y_proj = jax.nn.relu(jnp.einsum("bld,de->ble", cast(y), wT,
                                        preferred_element_type=f32) + bias)
        x_proj, y_proj = cast(x_proj), cast(y_proj)
    scores = jnp.einsum("bxd,byd->bxy", x_proj, y_proj,
                        preferred_element_type=f32)
    # -1e30 additive bias == masked_fill_(-inf) whenever a row has at least one
    # unmasked position (exp underflows to 0 either way).
    scores = scores + jnp.where(y_mask[:, None, :] != 0, f32(-1e30), f32(0.0))
    att = jax.nn.softmax(scores, axis=-1)
    return jnp.einsum("bxy,byd->bxd", cast(att), cast(y),
                      preferred_element_type=f32)


if __name__ == "__main__":
    B, Lx, Ly, D = 2, 16, 8, 32
    key = jax.random.PRNGKey(0)
    kx, ky, kw, kb = jax.random.split(key, 4)

    x = jax.random.normal(kx, (B, Lx, D), dtype=jnp.float32)
    y = jax.random.normal(ky, (B, Ly, D), dtype=jnp.float32)
    # deterministic mask: last 3 positions of each y sequence are masked
    y_mask = jnp.broadcast_to(
        (jnp.arange(Ly)[None, :] >= (Ly - 3)).astype(jnp.int32), (B, Ly))

    # deterministic nn.Linear(D, D)-shaped params
    bound = 1.0 / (D ** 0.5)
    weight = jax.random.uniform(kw, (D, D), jnp.float32, -bound, bound)
    bias = jax.random.uniform(kb, (D,), jnp.float32, -bound, bound)

    # --- linear + ReLU path (default module configuration) ---------------
    out = jax.block_until_ready(seq_att_alignment(x, y, y_mask, weight, bias))
    assert out.shape == (B, Lx, D)

    ref_bf16 = _reference(x, y, y_mask, weight, bias, emulate_bf16=True)
    ref_f32 = _reference(x, y, y_mask, weight, bias, emulate_bf16=False)
    assert jnp.allclose(out, ref_bf16, atol=2e-2, rtol=2e-2), \
        "mismatch vs bf16-emulated reference"
    # bf16 MXU operands (f32 accumulate) -> loose bound vs pure-f32 math
    assert jnp.allclose(out, ref_f32, atol=1e-1, rtol=1e-1), \
        "mismatch vs f32 reference"

    # --- identity path (module built with identity=True) -----------------
    out_id = jax.block_until_ready(
        seq_att_alignment(x, y, y_mask, identity=True))
    ref_id = _reference(x, y, y_mask, identity=True, emulate_bf16=True)
    assert out_id.shape == (B, Lx, D)
    assert jnp.allclose(out_id, ref_id, atol=2e-2, rtol=2e-2), \
        "identity path mismatch"

    print("KERNEL_OK")
</pallas_src>

<mosaic_0001>
module attributes {stable_mosaic.version = 11 : i64} {
  func.func @_linear_kernel(%arg0: i32, %arg1: i32, %arg2: memref<1x16x128xf32, #tpu.memory_space<vmem>>, %arg3: memref<1x8x128xf32, #tpu.memory_space<vmem>>, %arg4: memref<1x1x8xf32, #tpu.memory_space<vmem>>, %arg5: memref<128x128xbf16, #tpu.memory_space<vmem>>, %arg6: memref<1x128xf32, #tpu.memory_space<vmem>>, %arg7: memref<1x16x128xf32, #tpu.memory_space<vmem>>, %arg8: memref<8x128xbf16, #tpu.memory_space<vmem>>) attributes {dimension_semantics = [#tpu.dimension_semantics<parallel>, #tpu.dimension_semantics<arbitrary>], iteration_bounds = array<i64: 2, 1>, scalar_prefetch = 0 : i64, scratch_operands = 1 : i64, tpu.core_type = #tpu.core_type<tc>, window_params = [{transform_indices = @transform_0, window_bounds = array<i64: 1, 16, 128>}, {transform_indices = @transform_1, window_bounds = array<i64: 1, 8, 128>}, {transform_indices = @transform_2, window_bounds = array<i64: 1, 1, 8>}, {pipeline_mode = #tpu.pipeline_mode<synchronous>, transform_indices = @transform_3, window_bounds = array<i64: 128, 128>}, {pipeline_mode = #tpu.pipeline_mode<synchronous>, transform_indices = @transform_4, window_bounds = array<i64: 1, 128>}, {transform_indices = @transform_5, window_bounds = array<i64: 1, 16, 128>}]} {
    %c0_i32 = arith.constant 0 : i32
    %0 = arith.cmpi eq, %arg1, %c0_i32 : i32
    %1 = arith.extui %0 : i1 to i32
    %c0_i32_0 = arith.constant 0 : i32
    %2 = arith.cmpi ne, %1, %c0_i32_0 : i32
    scf.if %2 {
      %c0_23 = arith.constant 0 : index
      %c0_24 = arith.constant 0 : index
      %c0_25 = arith.constant 0 : index
      %38 = vector.load %arg3[%c0_23, %c0_24, %c0_25] : memref<1x8x128xf32, #tpu.memory_space<vmem>>, vector<1x8x128xf32>
      %39 = vector.shape_cast %38 : vector<1x8x128xf32> to vector<8x128xf32>
      %40 = arith.truncf %39 : vector<8x128xf32> to vector<8x128xbf16>
      %c0_26 = arith.constant 0 : index
      %c0_27 = arith.constant 0 : index
      %41 = vector.load %arg5[%c0_26, %c0_27] : memref<128x128xbf16, #tpu.memory_space<vmem>>, vector<128x128xbf16>
      %cst_28 = arith.constant dense<0.000000e+00> : vector<8x128xf32>
      %42 = tpu.matmul %40, %41, %cst_28 {dimension_numbers = #tpu.dot_dimension_numbers<[1], [0], [0], [1], [0, 0, 1, 1], [], []>} : vector<8x128xbf16>, vector<128x128xbf16>, vector<8x128xf32> -> vector<8x128xf32>
      %c0_29 = arith.constant 0 : index
      %c0_30 = arith.constant 0 : index
      %43 = vector.load %arg6[%c0_29, %c0_30] : memref<1x128xf32, #tpu.memory_space<vmem>>, vector<1x128xf32>
      %44 = vector.broadcast %43 : vector<1x128xf32> to vector<8x128xf32>
      %45 = arith.addf %42, %44 : vector<8x128xf32>
      %cst_31 = arith.constant 0.000000e+00 : f32
      %46 = vector.broadcast %cst_31 : f32 to vector<8x128xf32>
      %47 = arith.maximumf %45, %46 : vector<8x128xf32>
      %48 = arith.truncf %47 : vector<8x128xf32> to vector<8x128xbf16>
      %c0_32 = arith.constant 0 : index
      %c0_33 = arith.constant 0 : index
      %49 = vector.load %arg8[%c0_32, %c0_33] : memref<8x128xbf16, #tpu.memory_space<vmem>>, vector<8x128xbf16>
      tpu.vector_store %arg8[%c0_32, %c0_33], %48 {strides = array<i32>} : memref<8x128xbf16, #tpu.memory_space<vmem>>, vector<8x128xbf16>,
    } else {
    }
    %c0 = arith.constant 0 : index
    %c0_1 = arith.constant 0 : index
    %c0_2 = arith.constant 0 : index
    %3 = vector.load %arg2[%c0, %c0_1, %c0_2] : memref<1x16x128xf32, #tpu.memory_space<vmem>>, vector<1x16x128xf32>
    %4 = vector.shape_cast %3 : vector<1x16x128xf32> to vector<16x128xf32>
    %5 = arith.truncf %4 : vector<16x128xf32> to vector<16x128xbf16>
    %c0_3 = arith.constant 0 : index
    %c0_4 = arith.constant 0 : index
    %6 = vector.load %arg5[%c0_3, %c0_4] : memref<128x128xbf16, #tpu.memory_space<vmem>>, vector<128x128xbf16>
    %cst = arith.constant dense<0.000000e+00> : vector<16x128xf32>
    %7 = tpu.matmul %5, %6, %cst {dimension_numbers = #tpu.dot_dimension_numbers<[1], [0], [0], [1], [0, 0, 1, 1], [], []>} : vector<16x128xbf16>, vector<128x128xbf16>, vector<16x128xf32> -> vector<16x128xf32>
    %c0_5 = arith.constant 0 : index
    %c0_6 = arith.constant 0 : index
    %8 = vector.load %arg6[%c0_5, %c0_6] : memref<1x128xf32, #tpu.memory_space<vmem>>, vector<1x128xf32>
    %9 = vector.broadcast %8 : vector<1x128xf32> to vector<16x128xf32>
    %10 = arith.addf %7, %9 : vector<16x128xf32>
    %cst_7 = arith.constant 0.000000e+00 : f32
    %11 = vector.broadcast %cst_7 : f32 to vector<16x128xf32>
    %12 = arith.maximumf %10, %11 : vector<16x128xf32>
    %13 = arith.truncf %12 : vector<16x128xf32> to vector<16x128xbf16>
    %c0_8 = arith.constant 0 : index
    %c0_9 = arith.constant 0 : index
    %14 = vector.load %arg8[%c0_8, %c0_9] : memref<8x128xbf16, #tpu.memory_space<vmem>>, vector<8x128xbf16>
    %cst_10 = arith.constant dense<0.000000e+00> : vector<16x8xf32>
    %15 = tpu.matmul %13, %14, %cst_10 {dimension_numbers = #tpu.dot_dimension_numbers<[1], [1], [0], [0], [0, 0, 1, 0], [], []>} : vector<16x128xbf16>, vector<8x128xbf16>, vector<16x8xf32> -> vector<16x8xf32>
    %c0_11 = arith.constant 0 : index
    %c0_12 = arith.constant 0 : index
    %c0_13 = arith.constant 0 : index
    %16 = vector.load %arg4[%c0_11, %c0_12, %c0_13] : memref<1x1x8xf32, #tpu.memory_space<vmem>>, vector<1x1x8xf32>
    %17 = vector.shape_cast %16 : vector<1x1x8xf32> to vector<1x8xf32>
    %18 = vector.broadcast %17 : vector<1x8xf32> to vector<16x8xf32>
    %19 = arith.addf %15, %18 : vector<16x8xf32>
    %cst_14 = arith.constant dense<0xFF800000> : vector<16xf32>
    %20 = vector.multi_reduction <maximumf>, %19, %cst_14 [1] : vector<16x8xf32> to vector<16xf32>
    %21 = vector.shape_cast %20 : vector<16xf32> to vector<16x1xf32>
    %22 = vector.broadcast %21 : vector<16x1xf32> to vector<16x8xf32>
    %23 = arith.subf %19, %22 : vector<16x8xf32>
    %24 = math.exp %23 : vector<16x8xf32>
    %cst_15 = arith.constant dense<0.000000e+00> : vector<16xf32>
    %25 = vector.multi_reduction <add>, %24, %cst_15 [1] : vector<16x8xf32> to vector<16xf32>
    %26 = vector.shape_cast %25 : vector<16xf32> to vector<16x1xf32>
    %27 = tpu.reciprocal %26 {approx = true} : vector<16x1xf32> -> vector<16x1xf32>
    %28 = vector.broadcast %27 : vector<16x1xf32> to vector<16x8xf32>
    %29 = arith.mulf %24, %28 : vector<16x8xf32>
    %30 = arith.truncf %29 : vector<16x8xf32> to vector<16x8xbf16>
    %c0_16 = arith.constant 0 : index
    %c0_17 = arith.constant 0 : index
    %c0_18 = arith.constant 0 : index
    %31 = vector.load %arg3[%c0_16, %c0_17, %c0_18] : memref<1x8x128xf32, #tpu.memory_space<vmem>>, vector<1x8x128xf32>
    %32 = vector.shape_cast %31 : vector<1x8x128xf32> to vector<8x128xf32>
    %33 = arith.truncf %32 : vector<8x128xf32> to vector<8x128xbf16>
    %cst_19 = arith.constant dense<0.000000e+00> : vector<16x128xf32>
    %34 = tpu.matmul %30, %33, %cst_19 {dimension_numbers = #tpu.dot_dimension_numbers<[1], [0], [0], [1], [0, 0, 1, 1], [], []>} : vector<16x8xbf16>, vector<8x128xbf16>, vector<16x128xf32> -> vector<16x128xf32>
    %c0_20 = arith.constant 0 : index
    %c0_21 = arith.constant 0 : index
    %c0_22 = arith.constant 0 : index
    %35 = vector.load %arg7[%c0_20, %c0_21, %c0_22] : memref<1x16x128xf32, #tpu.memory_space<vmem>>, vector<1x16x128xf32>
    %36 = vector.shape_cast %35 : vector<1x16x128xf32> to vector<16x128xf32>
    %37 = vector.shape_cast %34 : vector<16x128xf32> to vector<1x16x128xf32>
    tpu.vector_store %arg7[%c0_20, %c0_21, %c0_22], %37 {strides = array<i32>} : memref<1x16x128xf32, #tpu.memory_space<vmem>>, vector<1x16x128xf32>,
    return
  }
  func.func @transform_0(%arg0: i32, %arg1: i32) -> (i32, i32, i32) {
    %c0_i32 = arith.constant 0 : i32
    %c0_i32_0 = arith.constant 0 : i32
    return %arg0, %arg1, %c0_i32 : i32, i32, i32
  }
  func.func @transform_1(%arg0: i32, %arg1: i32) -> (i32, i32, i32) {
    %c0_i32 = arith.constant 0 : i32
    %c0_i32_0 = arith.constant 0 : i32
    %c0_i32_1 = arith.constant 0 : i32
    return %arg0, %c0_i32, %c0_i32_0 : i32, i32, i32
  }
  func.func @transform_2(%arg0: i32, %arg1: i32) -> (i32, i32, i32) {
    %c0_i32 = arith.constant 0 : i32
    %c0_i32_0 = arith.constant 0 : i32
    %c0_i32_1 = arith.constant 0 : i32
    return %arg0, %c0_i32, %c0_i32_0 : i32, i32, i32
  }
  func.func @transform_3(%arg0: i32, %arg1: i32) -> (i32, i32) {
    %c0_i32 = arith.constant 0 : i32
    %c0_i32_0 = arith.constant 0 : i32
    %c0_i32_1 = arith.constant 0 : i32
    return %c0_i32, %c0_i32_0 : i32, i32
  }
  func.func @transform_4(%arg0: i32, %arg1: i32) -> (i32, i32) {
    %c0_i32 = arith.constant 0 : i32
    %c0_i32_0 = arith.constant 0 : i32
    %c0_i32_1 = arith.constant 0 : i32
    return %c0_i32, %c0_i32_0 : i32, i32
  }
  func.func @transform_5(%arg0: i32, %arg1: i32) -> (i32, i32, i32) {
    %c0_i32 = arith.constant 0 : i32
    %c0_i32_0 = arith.constant 0 : i32
    return %arg0, %arg1, %c0_i32 : i32, i32, i32
  }
}

</mosaic_0001>

<bundles_post_ra>
// kernel: tpu_custom_call.1
= control target key start
LH: loop header
LB: loop body
LE: loop exit
PB: predicated region body
PF: predicated region fallthrough
CT: control target
= control target key end

     0   :  { %s1505_s0 = inlined_call_operand.hbm [shape: f32[2,16,128], index: 0, kind: input, shape index: {}]   ;;  %s1506_s1 = inlined_call_operand.hbm [shape: f32[2,8,128], index: 1, kind: input, shape index: {}]   ;;  %s1507_s2 = inlined_call_operand.vmem [shape: f32[2,1,8], index: 2, kind: input, shape index: {}]   ;;  %s1508_s3 = inlined_call_operand.hbm [shape: bf16[128,128], index: 3, kind: input, shape index: {}]   ;;  %s1509_s4 = inlined_call_operand.vmem [shape: f32[1,128], index: 4, kind: input, shape index: {}]   ;;  %s1510_s5 = inlined_call_operand.hbm [shape: f32[2,16,128], index: 5, kind: output, shape index: {}]  }
   0x1   :  { %1516 = sst [smem:[#allocation19_spill]] %s1505_s0 }
   0x2   :  { %1517 = sst [smem:[#allocation20_spill]] %s1508_s3 }
   0x3   :  { %10 = vsyncpa [#allocation4], 0 }
   0x4   :  { %12 = vsyncpa [#allocation4 + $0x1], 0 }
   0x5   :  { %13 = vsyncpa [#allocation7], 0 }
   0x6   :  { %15 = vsyncpa [#allocation7 + $0x1], 0 }
   0x7   :  { %16 = vsyncpa [#allocation5], 0 }
   0x8   :  { %18 = vsyncpa [#allocation5 + $0x1], 0  ;;  %s1276_s18 = smov 0   ;;  %s1278_s19 = smov 0  }
   0x9   :  { %s1280_s20 = smov 0   ;;  %s1282_s21 = smov 0  }
   0xa   :  { %s1284_s22 = smov 0   ;;  %s1286_s23 = smov 0  }
   0xb LB: > { %1518 = sst [smem:[#allocation14_spill]] %s1220_s20  ;;  %s1307_s24 = sadd.s32 4294967295, %s1232_s23   ;;  %s1232_s23 = sphi %s1286_s23, %s24_s23   ;;  %s1228_s22 = sphi %s1284_s22, %s1542_s22   ;;  %s1224_s21 = sphi %s1282_s21, %s1541_s21   ;;  %s1220_s20 = sphi %s1280_s20, %s1537_s20   ;;  %s1216_s19 = sphi %s1278_s19, %s1540_s19   ;;  %s1212_s18 = sphi %s1276_s18, %s1539_s18  }
   0xc   : > { %1519 = sst [smem:[#allocation15_spill]] %s1232_s23  ;;  %s837_s25 = sadd.s32 4294967294, %s1232_s23  }
   0xd   : > { %p58_p0 = scmp.ne.s32.totalorder %s1216_s19, %s1212_s18  ;;  %p59_p1 = scmp.eq.s32.totalorder %s1307_s24, 0 }
   0xe   : > { %p184_p3 = scmp.eq.s32.totalorder %s837_s25, 1  ;;  %p838_p5 = scmp.ge.s32.totalorder %s1232_s23, 1 }
   0xf   : > { %p1316_p4 = por %p59_p1, %p58_p0  ;;  %p191_p7 = scmp.lt.s32.totalorder %s1232_s23, 3 }
  0x10   : > { %p1321_p6 = por %p184_p3, %p58_p0  ;;  %s1234_s29 = smov [#allocation8]  }
  0x11   : > { %p1326_p8 = pnand %p838_p5, %p191_p7  ;;  %s203_s30 = sshll.u32 %s1234_s29, 4  ;;  %s204_s30 = int_to_ptr.vmem [resolvable:$true] %s203_s30 }
  0x12   : > { %s1521_s27 = scalar_select %p1321_p6, 1, 0 }
  0x13   : > { %p962_p9 = pneg %p1326_p8  ;;  %p840_p10 = scmp.ge.s32.totalorder %s1232_s23, 2 }
  0x14   : > { %1522 = sst [smem:[#allocation16_spill]] %s1521_s27  ;;  %s36_s7 = sadd.s32 1, %s1228_s22 }
  0x15   : > { %p1335_p11 = pnand %p962_p9, %p59_p1  ;;  %s1073_s8 = scalar_lea.vmem %s204_s30, 1024 }
  0x16   : > { %p1074_p13 = scmp.ne.s32.totalorder %s204_s30, %s1073_s8  ;;  %p1081_p5 = scmp.lt.s32.totalorder %s204_s30, %s204_s30 }
  0x17   : > { %p1064_p12 = pneg %p1335_p11  ;;  %p1082_p7 = scmp.lt.s32.totalorder %s1073_s8, %s1073_s8 }
  0x19   : > { %p1076_p0 = pnand %p1074_p13, %p1064_p12  ;;  %p1083_p2 = por %p1082_p7, %p1081_p5 }
  0x1b   : > { %p1077_p3 = pneg %p1076_p0 }
  0x1d   : > { %p1084_p6 = pnand %p1083_p2, %p1077_p3 }
  0x1f   : > { %1087 = shalt.err (!%p1084_p6)
}
  0x20   : > { %s1235_s9 = smov 64   ;;  %s1236_s10 = smov 4  }
  0x21   : > { %s1525_s3 = sld [smem:[#allocation20_spill]]  ;;  %p38_p2 = scmp.ge.s32.totalorder %s36_s7, 2 }
  0x22   : > { %s45_s13 = sadd.s32 1, %s1220_s20  ;;  %p52_p6 = scmp.ne.s32.totalorder %s1220_s20, %s1216_s19 }
  0x23   : > { %p53_p9 = scmp.eq.s32.totalorder %s1232_s23, 0  ;;  %s1544_s7 = smov (%p38_p2, %s36_s7), 0 }
  0x24   : > { %1526 = sst [smem:[#allocation17_spill]] %s1544_s7  ;;  %p1528_p13 = scmp.eq.s32.totalorder %s1307_s24, 1 }
  0x25   : > { %p1353_p12 = por %p53_p9, %p52_p6  ;;  %s40_s16 = ssub.s32 %s1228_s22, %s1544_s7 }
  0x26   : > { %p1359_p0 = por %p1528_p13, %p52_p6  ;;  %p43_p3 = scmp.eq.s32.totalorder %s40_s16, 0 }
  0x27   : > { %965 = dma.hbm_to_vmem [thread:$0]  (!%p1335_p11), %s1525_s3, 1024, %s204_s30, [#allocation7], %s1235_s9, %s1235_s9, %s1236_s10  }
  0x28   : > { %p978_p11 = scmp.lt.s32.totalorder %s1232_s23, 2  ;;  %s1367_s17 = sand.u32 1, %s1220_s20  }
  0x29   : > { %s841_s25 = sshll.u32 %s1367_s17, 4  ;;  %s876_s30 = sshll.u32 %s1228_s22, 8 }
  0x2a   : > { %s1371_s29 = scalar_select %p43_p3, %s1220_s20, %s45_s13  }
  0x2b   : > { %s1531_s0 = sld [smem:[#allocation19_spill]]  ;;  %s224_s10 = scalar_lea.vmem [#allocation3], %s841_s25 }
  0x2c   : > { %1530 = sst [smem:[#allocation18_spill]] %s1371_s29  ;;  %s233_s11 = sshll.u32 %s224_s10, 4  ;;  %s234_s11 = int_to_ptr.vmem [resolvable:$true] %s233_s11 }
  0x2d   : > { %p1379_p5 = pnand %p978_p11, %p1353_p12  ;;  %s243_s16 = sand.u32 1, %s1232_s23  }
  0x2e   : > { %s221_s3 = scalar_lea.sflag [#allocation4], %s1367_s17  ;;  %s1101_s13 = scalar_lea.vmem %s234_s11, 256 }
  0x2f   : > { %p1090_p7 = pneg %p1379_p5  ;;  %p1102_p2 = scmp.ne.s32.totalorder %s234_s11, %s1101_s13 }
  0x30   : > { %s1237_s25 = smov [#allocation3]  }
  0x31   : > { %s232_s9 = scalar_lea.hbm %s1531_s0, %s876_s30  ;;  %p1104_p6 = pnand %p1102_p2, %p1090_p7 }
  0x32   : > { %s1106_s30 = sshll.u32 %s1237_s25, 4  ;;  %s1107_s30 = int_to_ptr.vmem [resolvable:$false] %s1106_s30 }
  0x33   : > { %p1105_p9 = pneg %p1104_p6  ;;  %s1108_s14 = scalar_lea.vmem %s1107_s30, 512 }
  0x34   : > { %p1109_p12 = scmp.lt.s32.totalorder %s234_s11, %s1107_s30  ;;  %p1110_p13 = scmp.lt.s32.totalorder %s1108_s14, %s1101_s13 }
  0x36   : > { %p1111_p11 = por %p1110_p13, %p1109_p12 }
  0x38   : > { %p1112_p3 = pnand %p1111_p11, %p1105_p9 }
  0x3a   : > { %1115 = shalt.err (!%p1112_p3)
}
  0x3b   : > { %s1238_s6 = smov 128   ;;  %s1239_s8 = smov 8  }
  0x3c   : > { %969 = dma.hbm_to_vmem [thread:$0]  (!%p1379_p5), %s232_s9, 256, %s234_s11, %s221_s3, %s1238_s6, %s1238_s6, %s1239_s8  }
  0x3d   : > { %s844_s10 = sshll.u32 %s1367_s17, 3  ;;  %s845_s0 = sshll.u32 %s1228_s22, 7 }
  0x3e   : > { %s252_s25 = scalar_lea.hbm %s1506_s1, %s845_s0  ;;  %s247_s20 = scalar_lea.vmem [#allocation6], %s844_s10 }
  0x3f   : > { %s254_s30 = sshll.u32 %s247_s20, 4  ;;  %s244_s13 = scalar_lea.sflag [#allocation7], %s243_s16  ;;  %s255_s30 = int_to_ptr.vmem [resolvable:$true] %s254_s30 }
  0x40   : > { %s1129_s14 = scalar_lea.vmem %s255_s30, 128  ;;  %s1240_s23 = smov [#allocation6]  }
  0x41   : > { %p1130_p2 = scmp.ne.s32.totalorder %s255_s30, %s1129_s14  ;;  %s1134_s27 = sshll.u32 %s1240_s23, 4  ;;  %s1135_s27 = int_to_ptr.vmem [resolvable:$false] %s1134_s27 }
  0x42   : > { %s1136_s3 = scalar_lea.vmem %s1135_s27, 256  ;;  %p1137_p12 = scmp.lt.s32.totalorder %s255_s30, %s1135_s27 }
  0x43   : > { %p1132_p6 = pnand %p1130_p2, %p1090_p7  ;;  %p1138_p13 = scmp.lt.s32.totalorder %s1136_s3, %s1129_s14 }
  0x45   : > { %p1133_p9 = pneg %p1132_p6  ;;  %p1139_p11 = por %p1138_p13, %p1137_p12 }
  0x47   : > { %p1140_p3 = pnand %p1139_p11, %p1133_p9 }
  0x49   : > { %1143 = shalt.err (!%p1140_p3)
}
  0x4a   : > { %972 = dma.hbm_to_vmem [thread:$0]  (!%p1379_p5), %s252_s25, 128, %s255_s30, %s244_s13  }
  0x4b   : > { %269 = sbr.rel (%p1326_p8) target bundleno = 1059 (0x423), region = 40  ;;  %s1405_s0 = sand.u32 (!%p1326_p8), 1, %s1216_s19  }
  0x4c   : > { %s847_s20 = sshll.u32 (!%p1326_p8), %s1405_s0, 4  ;;  %s272_s23 = scalar_lea.sflag (!%p1326_p8), [#allocation4], %s1405_s0 }
  0x4d   : > { %s1411_s27 = scalar_lea.vmem (!%p1326_p8), [#allocation3], %s847_s20 }
  0x50   : > { %1195 = dma.done.wait (%p1316_p4), %s272_s23, 256  }
  0x51   : > { %1197 = vsyncadd (%p1316_p4), %s272_s23, 4294967040  ;;  %s280_s28 = sand.u32 1, %s1307_s24   ;;  %s848_s7 = sshll.u32 %s1405_s0, 3 }
  0x52   : > { %s281_s17 = scalar_lea.sflag [#allocation7], %s280_s28  ;;  %s1419_s29 = scalar_lea.vmem [#allocation6], %s848_s7 }
  0x53   : > { %1199 = dma.done.wait (%p1316_p4), %s281_s17, 128  }
  0x54   : > { %1201 = vsyncadd (%p1316_p4), %s281_s17, 4294967168 }
  0x55   : > { %1203 = dma.done.wait (%p59_p1), [#allocation7], 1024  }
  0x56   : > { %1205 = vsyncadd (%p59_p1), [#allocation7], 4294966272  ;;  %v1241_v0 = vmov 0.0   ;;  %vm1242_vm0 = vmmov 0   ;;  %v1038_v1 = vld [vmem:[#allocation8 + $0x38] sm:$0xff]   ;;  %v1039_v2 = vld [vmem:[#allocation8 + $0x30] sm:$0xff]  }
  0x57   : > { %900 = vmatprep.subr.bf16.mxu0 %v1241_v0  ;;  %920 = vmatprep.subr.bf16.mxu1 %v1241_v0  ;;  %v1040_v3 = vld [vmem:[#allocation8 + $0x38] sm:$0xff]   ;;  %v1042_v4 = vld [vmem:[#allocation8 + $0x30] sm:$0xff]   ;;  %v1041_v5 = vld [vmem:[#allocation8 + $0x28] sm:$0xff]   ;;  %p324_p1 = scmp.lt.s32.totalorder %s1224_s21, 1  ;;  %vm616_vm1 = vcmask 64512   ;;  %vm645_vm2 = vcmask 1043456  }
  0x58   : > { %916 = vmatprep.mubr.msk.bf16.mxu0 %vm1242_vm0, %v1241_v0  ;;  %936 = vmatprep.mubr.msk.bf16.mxu1 %vm1242_vm0, %v1241_v0  ;;  %v1044_v6 = vld [vmem:[#allocation8 + $0x28] sm:$0xff]   ;;  %v1043_v7 = vld [vmem:[#allocation8 + $0x20] sm:$0xff]   ;;  %v1045_v9 = vld [vmem:[#allocation8 + $0x18] sm:$0xff]   ;;  %s322_s6 = scalar_lea.vmem [#allocation9], %s847_s20  ;;  %s877_s10 = sshll.u32 %s1224_s21, 8 }
  0x59   : > { %901 = vmatpush3.bf16.msra.mxu0 %v1038_v1  ;;  %921 = vmatpush3.bf16.msra.mxu1 %v1040_v3  ;;  %v1046_v8 = vld [vmem:[#allocation8 + $0x20] sm:$0xff]   ;;  %v1048_v10 = vld [vmem:[#allocation8 + $0x18] sm:$0xff]   ;;  %v1047_v11 = vld [vmem:[#allocation8 + $0x10] sm:$0xff]   ;;  %s325_s9 = scalar_select %p324_p1, %s1224_s21, 1 }
  0x5a   : > { %902 = vmatprep.subr.bf16.mxu0 %v1241_v0  ;;  %922 = vmatprep.subr.bf16.mxu1 %v1241_v0  ;;  %v1050_v12 = vld [vmem:[#allocation8 + $0x10] sm:$0xff]   ;;  %v1049_v13 = vld [vmem:[#allocation8 + $0x8] sm:$0xff]   ;;  %v1051_v15 = vld [vmem:[#allocation8] sm:$0xff]   ;;  %s708_s8 = sshll.u32 %s322_s6, 4  ;;  %s1457_s13 = scalar_lea.hbm %s1510_s5, %s877_s10  ;;  %s1452_s8 = int_to_ptr.vmem [resolvable:$true] %s708_s8 }
  0x5b   : > { %v1052_v14 = vld [vmem:[#allocation8 + $0x8] sm:$0xff]   ;;  %v333_v16 = vld [vmem:[%s1419_s29] sm:$0xff]  ;;  %v1053_v17 = vld [vmem:[#allocation8] sm:$0xff]   ;;  %s326_s16 = scalar_lea.vmem %s1507_s2, %s325_s9  ;;  %s693_s14 = scalar_lea.sflag [#allocation5], %s1405_s0 }
  0x5c   : > { %v449_v18 = vld [vmem:[%s1411_s27] sm:$0xff]  ;;  %v450_v19 = vld [vmem:[%s1411_s27 + $0x8] sm:$0xff]  ;;  %v334_v20 = vpack.c.bf16 %v333_v16, %v333_v16  ;;  %s1144_s3 = scalar_lea.vmem %s1452_s8, 256  ;;  %s1243_s21 = smov [#allocation9]  }
  0x5d   : > { %903 = vmatpush3.bf16.msra.mxu0 %v1039_v2  ;;  %923 = vmatpush3.bf16.msra.mxu1 %v1042_v4  ;;  %v451_v21 = vpack.c.bf16 %v450_v19, %v449_v18  ;;  %v851_v22 = vld [vmem:[%s1509_s4] ss:$0 sm:$0xff]  ;;  %p1145_p4 = scmp.ne.s32.totalorder %s1452_s8, %s1144_s3  ;;  %s1148_s20 = sshll.u32 %s1243_s21, 4  ;;  %s1149_s20 = int_to_ptr.vmem [resolvable:$false] %s1148_s20 }
  0x5e   : > { %904 = vmatprep.subr.bf16.mxu0 %v1241_v0  ;;  %924 = vmatprep.subr.bf16.mxu1 %v1241_v0  ;;  %v869_v40 = vld [vmem:[%s326_s16] ss:$0 sm:$0xff]  ;;  %v647_v59 = vsel %vm645_vm2, %v334_v20, 0  ;;  %s1150_s23 = scalar_lea.vmem %s1149_s20, 512  ;;  %p1151_p7 = scmp.lt.s32.totalorder %s1452_s8, %s1149_s20 }
  0x5f   : > { %p1146_p8 = pnand %p1145_p4, %p1359_p0  ;;  %p1152_p2 = scmp.lt.s32.totalorder %s1150_s23, %s1144_s3 }
  0x61   : > { %905 = vmatpush3.bf16.msra.mxu0 %v1041_v5  ;;  %925 = vmatpush3.bf16.msra.mxu1 %v1044_v6  ;;  %p1147_p5 = pneg %p1146_p8  ;;  %p1153_p6 = por %p1152_p2, %p1151_p7 }
  0x62   : > { %906 = vmatprep.subr.bf16.mxu0 %v1241_v0  ;;  %926 = vmatprep.subr.bf16.mxu1 %v1241_v0 }
  0x63   : > { %p1154_p9 = pnand %p1153_p6, %p1147_p5 }
  0x65   : > { %907 = vmatpush3.bf16.msra.mxu0 %v1043_v7  ;;  %927 = vmatpush3.bf16.msra.mxu1 %v1046_v8 }
  0x66   : > { %908 = vmatprep.subr.bf16.mxu0 %v1241_v0  ;;  %928 = vmatprep.subr.bf16.mxu1 %v1241_v0 }
  0x69   : > { %909 = vmatpush3.bf16.msra.mxu0 %v1045_v9  ;;  %929 = vmatpush3.bf16.msra.mxu1 %v1048_v10 }
  0x6a   : > { %910 = vmatprep.subr.bf16.mxu0 %v1241_v0  ;;  %930 = vmatprep.subr.bf16.mxu1 %v1241_v0 }
  0x6d   : > { %911 = vmatpush3.bf16.msra.mxu0 %v1047_v11  ;;  %931 = vmatpush3.bf16.msra.mxu1 %v1050_v12 }
  0x6e   : > { %912 = vmatprep.subr.bf16.mxu0 %v1241_v0  ;;  %932 = vmatprep.subr.bf16.mxu1 %v1241_v0 }
  0x71   : > { %913 = vmatpush3.bf16.msra.mxu0 %v1049_v13  ;;  %933 = vmatpush3.bf16.msra.mxu1 %v1052_v14 }
  0x72   : > { %914 = vmatprep.subr.bf16.mxu0 %v1241_v0  ;;  %934 = vmatprep.subr.bf16.mxu1 %v1241_v0 }
  0x75   : > { %915 = vmatpush3.bf16.msra.mxu0 %v1051_v15  ;;  %935 = vmatpush3.bf16.msra.mxu1 %v1053_v17 }
  0x76   : > { %940 = vmatprep.subr.bf16.mxu0 %v1241_v0  ;;  %946 = vmatprep.subr.bf16.mxu1 %v1241_v0 }
  0x78   : > { %917 = vmatmul.mubr.bf16.vlgmr.msra.gmra.mxu0 %v334_v20  ;;  %937 = vmatmul.mubr.bf16.vlgmr.msra.gmra.mxu1 %v451_v21 }
  0x79   : > { %942 = vmatprep.mubr.msk.bf16.mxu0 %vm1242_vm0, %v1241_v0  ;;  %948 = vmatprep.mubr.msk.bf16.mxu1 %vm1242_vm0, %v1241_v0 }
  0x7a   : > { %947 = vmatpush3.bf16.msra.mxu1 %v647_v59 }
 0x138   : > { %v440_v23 = vpop.f32.mrf.mxu0  ;;  %v557_v26 = vpop.f32.mrf.mxu1 }
 0x139   : > { %v441_v24 = vadd.f32 %v851_v22, %v440_v23  ;;  %v558_v34 = vadd.f32 %v851_v22, %v557_v26 }
 0x13a   : > { %v918_v25 = vpop.f32.mrf.mxu0  ;;  %v938_v29 = vpop.f32.mrf.mxu1 }
 0x13b   : > { %v446_v27 = vmax.f32 %v441_v24, 0.0  ;;  %v564_v37 = vmax.f32 %v558_v34, 0.0 }
 0x13c   : > { %v443_v28 = vpop.f32.mrf.mxu0  ;;  %v560_v32 = vpop.f32.mrf.mxu1 }
 0x13d   : > { %v447_v30 = vpack.c.bf16 %v446_v27, %v446_v27  ;;  %v561_v35 = vadd.f32 %v851_v22, %v560_v32 }
 0x13e   : > { %v919_v31 = vpop.f32.mrf.mxu0  ;;  %v939_v33 = vpop.f32.mrf.mxu1 }
 0x13f   : > { %448 = vst [vmem:[#allocation2] sm:$0xf] %v447_v30  ;;  %v565_v38 = vmax.f32 %v561_v35, 0.0 }
 0x141   : > { %v566_v39 = vpack.c.bf16 %v565_v38, %v564_v37 }
 0x146   : > { %v567_v36 = vld [vmem:[#allocation2] sm:$0xf] }
 0x147   : > { %941 = vmatpush3.bf16.xpose.msra.mxu0 %v567_v36 }
 0x14e   : > { %943 = vmatmul.mubr.bf16.vlgmr.msra.gmra.mxu0 %v566_v39 }
 0x20e   : > { %v609_v41 = vpop.f32.mrf.mxu0 }
 0x20f   : > { %v610_v42 = vadd.f32 %v869_v40, %v609_v41 }
 0x210   : > { %v944_v43 = vpop.f32.mrf.mxu0 }
 0x211   : > { %v617_v44 = vsel %vm616_vm1, %v610_v42, -inf }
 0x212   : > { %618 = vmax.xlane.f32.xlu0 %v617_v44  ;;  %v612_v45 = vpop.f32.mrf.mxu0 }
 0x213   : > { %v613_v46 = vadd.f32 %v869_v40, %v612_v45 }
 0x214   : > { %v945_v47 = vpop.f32.mrf.mxu0 }
 0x215   : > { %v620_v48 = vsel %vm616_vm1, %v613_v46, -inf }
 0x216   : > { %621 = vmax.xlane.f32.xlu0 %v620_v48 }
 0x29b   : > { %v619_v49 = vpop.xlane.xlu0 %618 }
 0x29c   : > { %v623_v50 = vsub.f32 %v610_v42, %v619_v49 }
 0x29e   : > { %v625_v51 = vmul.f32 1.442695, %v623_v50 }
 0x29f   : > { %v622_v52 = vpop.xlane.xlu0 %621 }
 0x2a0   : > { %1054 = vpow2.f32 %v625_v51  ;;  %v624_v53 = vsub.f32 %v613_v46, %v622_v52 }
 0x2a2   : > { %v627_v54 = vmul.f32 1.442695, %v624_v53 }
 0x2a4   : > { %1056 = vpow2.f32 %v627_v54 }
 0x2ad   : > { %v1055_v55 = vpop.eup %1054 }
 0x2ae   : > { %v629_v56 = vsel %vm616_vm1, %v1055_v55, 0.0 }
 0x2af   : > { %630 = vadd.xlane.f32.xlu1 %v629_v56 }
 0x2b1   : > { %v1057_v57 = vpop.eup %1056 }
 0x2b2   : > { %v632_v58 = vsel %vm616_vm1, %v1057_v57, 0.0 }
 0x2b3   : > { %633 = vadd.xlane.f32.xlu1 %v632_v58 }
 0x338   : > { %v631_v60 = vpop.xlane.xlu1 %630 }
 0x339   : > { %1058 = vrcp.f32 %v631_v60 }
 0x33c   : > { %v634_v61 = vpop.xlane.xlu1 %633 }
 0x33d   : > { %1060 = vrcp.f32 %v634_v61 }
 0x346   : > { %v1059_v62 = vpop.eup %1058 }
 0x347   : > { %v637_v1 = vmul.f32 %v1059_v62, %v1055_v55 }
 0x34a   : > { %v1061_v63 = vpop.eup %1060 }
 0x34b   : > { %v638_v0 = vmul.f32 %v1061_v63, %v1057_v57 }
 0x34d   : > { %v639_v2 = vpack.c.bf16 %v638_v0, %v637_v1 }
 0x34f   : > { %949 = vmatmul.mubr.msk.bf16.vlgmr.msra.gmra.mxu1 %vm616_vm1, %v639_v2 }
 0x40f   : > { %v683_v3 = vpop.f32.mrf.mxu1 }
 0x410   : > { %690 = vst [vmem:[%s322_s6] sm:$0xff] %v683_v3 }
 0x411   : > { %v950_v4 = vpop.f32.mrf.mxu1 }
 0x413   : > { %v686_v5 = vpop.f32.mrf.mxu1 }
 0x414   : > { %691 = vst [vmem:[%s322_s6 + $0x8] sm:$0xff] %v686_v5 }
 0x415   : > { %v951_v6 = vpop.f32.mrf.mxu1 }
 0x416   : > { %1157 = shalt.err (!%p1154_p9)
}
 0x417   : > { %s1158_s27 = scalar_lea.hbm %s1457_s13, 256  ;;  %s1162_s17 = scalar_lea.hbm %s1510_s5, 512 }
 0x418   : > { %p1159_p12 = scmp.ne.s32.totalorder %s1457_s13, %s1158_s27  ;;  %p1163_p3 = scmp.lt.s32.totalorder %s1457_s13, %s1510_s5 }
 0x419   : > { %p1164_p1 = scmp.lt.s32.totalorder %s1162_s17, %s1158_s27 }
 0x41a   : > { %p1160_p13 = pnand %p1159_p12, %p1359_p0 }
 0x41b   : > { %p1165_p4 = por %p1164_p1, %p1163_p3 }
 0x41c   : > { %p1161_p11 = pneg %p1160_p13 }
 0x41e   : > { %p1166_p8 = pnand %p1165_p4, %p1161_p11 }
 0x420   : > { %1169 = shalt.err (!%p1166_p8)
}
 0x421   : > { %s1244_s26 = smov 128   ;;  %s1245_s9 = smov 8  }
 0x422   : > { %960 = dma.vmem_to_hbm [thread:$0]  (%p1359_p0), %s1452_s8, 256, %s1457_s13, %s693_s14, %s1244_s26, %s1244_s26, %s1245_s9  }
 0x423 PF: > { %s1533_s11 = sld [smem:[#allocation16_spill]]  ;;  %s723_s16 = sand.u32 1, %s1212_s18  }
 0x424   : > { %s1534_s12 = sld [smem:[#allocation15_spill]]  ;;  %s724_s6 = scalar_lea.sflag [#allocation5], %s723_s16 }
 0x429   : > { %p1535_p5 = scmp.ne.s32.totalorder %s1533_s11, 0 }
 0x42b   : > { %p974_p7 = pnand %p840_p10, %p1535_p5 }
 0x42d   : > { %p975_p2 = pneg %p974_p7 }
 0x42f   : > { %1207 = dma.done.wait (%p975_p2), %s724_s6, 256  }
 0x430   : > { %1209 = vsyncadd (%p975_p2), %s724_s6, 4294967040  ;;  %s24_s23 = sadd.s32 1, %s1534_s12   ;;  %s1536_s10 = sld [smem:[#allocation14_spill]] }
 0x431   : > { %p21_p6 = scmp.ge.s32.totalorder %s24_s23, 4   ;;  %s1537_s20 = sld [smem:[#allocation18_spill]] }
 0x432   : > { %s1538_s15 = sld [smem:[#allocation17_spill]]  ;;  %s1539_s18 = smov %s1216_s19 }
 0x433   : > { %s1541_s21 = smov %s1228_s22 }
 0x434   :  { %23 = sbr.rel (!%p21_p6) target bundleno = 11 (0xb), region = 109 }
 0x436   : > { %s1540_s19 = smov %s1536_s10 }
 0x438   : > { %s1542_s22 = smov %s1538_s15 }
 0x439   :  { %729 = vsyncpa [#allocation4], 1 }
 0x43a   :  { %731 = vsyncpa [#allocation4 + $0x1], 1 }
 0x43b   :  { %732 = vsyncpa [#allocation7], 1 }
 0x43c   :  { %734 = vsyncpa [#allocation7 + $0x1], 1 }
 0x43d   :  { %735 = vsyncpa [#allocation5], 1 }
 0x43e   :  { %737 = vsyncpa [#allocation5 + $0x1], 1 }

</bundles_post_ra>
